<compile_context>
chip_gen: v7x
topology: tpu7x:2x2x1
jax: 0.10.0
libtpu: 0.0.40
codegen_flags: <defaults>
</compile_context>

<pallas_src>
import jax
import jax.numpy as jnp
from jax import lax
from jax.experimental import pallas as pl
from jax.experimental.pallas import tpu as pltpu


def _pick_tile(total: int, target: int, align: int) -> int:
    """Largest multiple of `align` that is <= min(total, target).
    If total <= align, returns total (a full-extent block dim is always legal)."""
    if total <= align:
        return total
    t = min(total, target)
    return max(align, (t // align) * align)


def emb_gate_kernel(t_ref, w_ref, b_ref, o_ref):
    # t_ref: (B, E)   w_ref: (Ct, E) [torch layout]   b_ref: (Ct, 1)
    # o_ref: (B, Ct, St)  -- lane axis carries flattened spatial (unmasked stores).
    B, Ct, St = o_ref.shape

    # SiLU in f32 (v5e has no bf16 VPU/EUP), back to native dtype for the MXU,
    # f32 accumulation.  Recomputed every step: trivially cheap vs. the output DMA.
    t32 = t_ref[...].astype(jnp.float32)
    silu = (t32 * jax.nn.sigmoid(t32)).astype(t_ref.dtype)
    emb = lax.dot_general(
        silu, w_ref[...],
        dimension_numbers=(((1,), (1,)), ((), ())),   # contract over E: (B, Ct)
        preferred_element_type=jnp.float32)
    emb3 = emb[:, :, None] + b_ref[...].astype(jnp.float32)[None, :, :]  # (B, Ct, 1)

    # Cast once, then pure lane-broadcast of the per-(b, c) scalar across spatial.
    o_ref[...] = jnp.broadcast_to(emb3.astype(o_ref.dtype), (B, Ct, St))


def emb_gate(t, weight, bias, x, *, c_tile_target=256):
    """t: (B, emb_dim); weight: (out_channels, emb_dim) [torch layout];
    bias: (out_channels,); x: (B, C_x, H, W).  Returns (B, out_channels, H, W)."""
    B, E = t.shape
    C = weight.shape[0]
    H, W = x.shape[-2], x.shape[-1]
    HW = H * W
    dtype_bytes = jnp.dtype(t.dtype).itemsize

    # Channel tile: sublane axis of the weight/bias/output blocks -> 8-alignment.
    tile_c = _pick_tile(C, c_tile_target, 8)

    # Generation-aware output-block budget (v7x has only 64 MiB physical VMEM).
    try:
        vmem_bytes = int(pltpu.get_tpu_info().vmem_capacity_bytes)
    except Exception:  # pragma: no cover - conservative fallback
        vmem_bytes = 64 << 20
    block_budget = min(8 << 20, max(2 << 20, vmem_bytes // 8))

    # Spatial tile: lane axis -> 128-alignment; sized so one output block fits budget.
    s_target = max(128, block_budget // max(1, B * tile_c * dtype_bytes))
    tile_s = _pick_tile(HW, s_target, 128)

    grid = (pl.cdiv(HW, tile_s), pl.cdiv(C, tile_c))   # spatial first (many tiles)

    block_bytes = B * tile_c * tile_s * dtype_bytes
    vmem_limit = max(2 * block_bytes + (8 << 20), 32 << 20)
    vmem_limit = min(vmem_limit, max(vmem_bytes - (8 << 20), 32 << 20))

    bias2 = bias.reshape(C, 1)   # tile_c on sublanes; lane dim 1 == full extent

    out_bytes = B * C * HW * dtype_bytes
    in_bytes = (B * E + C * E + C) * dtype_bytes
    cost = pl.CostEstimate(
        flops=2 * B * E * C * grid[0] * grid[1],
        transcendentals=B * E * grid[0] * grid[1],
        bytes_accessed=in_bytes + out_bytes,
    )

    out_flat = pl.pallas_call(
        emb_gate_kernel,
        out_shape=jax.ShapeDtypeStruct((B, C, HW), t.dtype),
        grid_spec=pltpu.PrefetchScalarGridSpec(
            num_scalar_prefetch=0,
            grid=grid,
            in_specs=[
                pl.BlockSpec((B, E), lambda s, c: (0, 0)),
                pl.BlockSpec((tile_c, E), lambda s, c: (c, 0)),
                pl.BlockSpec((tile_c, 1), lambda s, c: (c, 0)),
            ],
            out_specs=pl.BlockSpec((B, tile_c, tile_s), lambda s, c: (0, c, s)),
        ),
        compiler_params=pltpu.CompilerParams(
            # No cross-step state -> both axes independent; v7x megacore can split
            # the (leading) spatial axis.  No effect on single-TC v5e/v6e.
            dimension_semantics=("parallel", "parallel"),
            vmem_limit_bytes=int(vmem_limit),
        ),
        cost_estimate=cost,
    )(t, weight, bias2)

    # Free metadata reshape to the NCHW layout the PyTorch module returns.
    return out_flat.reshape(B, C, H, W)


def emb_gate_ref(t, weight, bias, x):
    silu = t * jax.nn.sigmoid(t)
    emb = silu @ weight.T + bias
    H, W = x.shape[-2], x.shape[-1]
    return jnp.broadcast_to(emb[:, :, None, None], emb.shape + (H, W))


if __name__ == "__main__":
    key = jax.random.PRNGKey(0)
    k_t, k_x, k_w, k_b = jax.random.split(key, 4)

    B = 2
    emb_dim = 32
    out_channels = 8
    C_x, H, W = 4, 16, 16

    t = jax.random.normal(k_t, (B, emb_dim), dtype=jnp.float32)
    x = jax.random.normal(k_x, (B, C_x, H, W), dtype=jnp.float32)
    # Deterministic parameter init (nn.Linear(emb_dim, out_channels) shapes).
    weight = jax.random.normal(k_w, (out_channels, emb_dim), dtype=jnp.float32) * 0.05
    bias = jax.random.normal(k_b, (out_channels,), dtype=jnp.float32) * 0.05

    out = emb_gate(t, weight, bias, x)
    out = jax.block_until_ready(out)

    ref = emb_gate_ref(t, weight, bias, x)
    assert out.shape == (B, out_channels, H, W), out.shape
    assert jnp.allclose(out, ref, atol=1e-5, rtol=1e-5), float(jnp.max(jnp.abs(out - ref)))

    print("KERNEL_OK")
</pallas_src>

<mosaic_0001>
module attributes {stable_mosaic.version = 11 : i64} {
  func.func @emb_gate_kernel(%arg0: i32, %arg1: i32, %arg2: memref<2x32xf32, #tpu.memory_space<vmem>>, %arg3: memref<8x32xf32, #tpu.memory_space<vmem>>, %arg4: memref<8x1xf32, #tpu.memory_space<vmem>>, %arg5: memref<2x8x256xf32, #tpu.memory_space<vmem>>) attributes {dimension_semantics = [#tpu.dimension_semantics<parallel>, #tpu.dimension_semantics<parallel>], iteration_bounds = array<i64: 1, 1>, scalar_prefetch = 0 : i64, scratch_operands = 0 : i64, tpu.core_type = #tpu.core_type<tc>, window_params = [{pipeline_mode = #tpu.pipeline_mode<synchronous>, transform_indices = @transform_0, window_bounds = array<i64: 2, 32>}, {transform_indices = @transform_1, window_bounds = array<i64: 8, 32>}, {transform_indices = @transform_2, window_bounds = array<i64: 8, 1>}, {transform_indices = @transform_3, window_bounds = array<i64: 2, 8, 256>}]} {
    %c0 = arith.constant 0 : index
    %c0_0 = arith.constant 0 : index
    %0 = vector.load %arg2[%c0, %c0_0] : memref<2x32xf32, #tpu.memory_space<vmem>>, vector<2x32xf32>
    %1 = arith.negf %0 : vector<2x32xf32>
    %2 = math.exp %1 : vector<2x32xf32>
    %cst = arith.constant 1.000000e+00 : f32
    %3 = vector.broadcast %cst : f32 to vector<2x32xf32>
    %4 = arith.addf %3, %2 : vector<2x32xf32>
    %5 = arith.divf %3, %4 : vector<2x32xf32>
    %6 = arith.mulf %0, %5 : vector<2x32xf32>
    %c0_1 = arith.constant 0 : index
    %c0_2 = arith.constant 0 : index
    %7 = vector.load %arg3[%c0_1, %c0_2] : memref<8x32xf32, #tpu.memory_space<vmem>>, vector<8x32xf32>
    %cst_3 = arith.constant dense<0.000000e+00> : vector<2x8xf32>
    %8 = tpu.matmul %6, %7, %cst_3 {dimension_numbers = #tpu.dot_dimension_numbers<[1], [1], [0], [0], [0, 0, 1, 0], [], []>} : vector<2x32xf32>, vector<8x32xf32>, vector<2x8xf32> -> vector<2x8xf32>
    %9 = vector.shape_cast %8 : vector<2x8xf32> to vector<2x8x1xf32>
    %c0_4 = arith.constant 0 : index
    %c0_5 = arith.constant 0 : index
    %10 = vector.load %arg4[%c0_4, %c0_5] : memref<8x1xf32, #tpu.memory_space<vmem>>, vector<8x1xf32>
    %11 = vector.shape_cast %10 : vector<8x1xf32> to vector<1x8x1xf32>
    %12 = vector.broadcast %11 : vector<1x8x1xf32> to vector<2x8x1xf32>
    %13 = arith.addf %9, %12 : vector<2x8x1xf32>
    %14 = vector.shape_cast %13 : vector<2x8x1xf32> to vector<2x8x1xf32>
    %15 = vector.broadcast %14 : vector<2x8x1xf32> to vector<2x8x256xf32>
    %c0_6 = arith.constant 0 : index
    %c0_7 = arith.constant 0 : index
    %c0_8 = arith.constant 0 : index
    %16 = vector.load %arg5[%c0_6, %c0_7, %c0_8] : memref<2x8x256xf32, #tpu.memory_space<vmem>>, vector<2x8x256xf32>
    tpu.vector_store %arg5[%c0_6, %c0_7, %c0_8], %15 {strides = array<i32>} : memref<2x8x256xf32, #tpu.memory_space<vmem>>, vector<2x8x256xf32>,
    return
  }
  func.func @transform_0(%arg0: i32, %arg1: i32) -> (i32, i32) {
    %c0_i32 = arith.constant 0 : i32
    %c0_i32_0 = arith.constant 0 : i32
    %c0_i32_1 = arith.constant 0 : i32
    return %c0_i32, %c0_i32_0 : i32, i32
  }
  func.func @transform_1(%arg0: i32, %arg1: i32) -> (i32, i32) {
    %c0_i32 = arith.constant 0 : i32
    %c0_i32_0 = arith.constant 0 : i32
    return %arg1, %c0_i32 : i32, i32
  }
  func.func @transform_2(%arg0: i32, %arg1: i32) -> (i32, i32) {
    %c0_i32 = arith.constant 0 : i32
    %c0_i32_0 = arith.constant 0 : i32
    return %arg1, %c0_i32 : i32, i32
  }
  func.func @transform_3(%arg0: i32, %arg1: i32) -> (i32, i32, i32) {
    %c0_i32 = arith.constant 0 : i32
    %c0_i32_0 = arith.constant 0 : i32
    return %c0_i32, %arg1, %arg0 : i32, i32, i32
  }
}

</mosaic_0001>

<bundles_post_ra>
// kernel: tpu_custom_call.1
= control target key start
LH: loop header
LB: loop body
LE: loop exit
PB: predicated region body
PF: predicated region fallthrough
CT: control target
= control target key end

     0   :  { %vm24_vm0 = vcmask 261120   ;;  %v194_v2 = vmov 0.0   ;;  %vm195_vm1 = vmmov 0   ;;  %s241_s0 = inlined_call_operand.vmem [shape: f32[2,32], index: 0, kind: input, shape index: {}]   ;;  %s242_s1 = inlined_call_operand.vmem [shape: f32[8,32], index: 1, kind: input, shape index: {}]   ;;  %s243_s2 = inlined_call_operand.vmem [shape: f32[8,1], index: 2, kind: input, shape index: {}]   ;;  %s244_s3 = inlined_call_operand.hbm [shape: f32[2,8,256], index: 3, kind: output, shape index: {}]  }
   0x1   :  { %v23_v0 = vld [vmem:[%s242_s1] sm:$0xff]  ;;  %153 = vmatprep.subr.mxu0 %v194_v2  ;;  %155 = vmatprep.mubr.msk.f32.mxu0 %vm195_vm1, %v194_v2 }
   0x2   :  { %v15_v1 = vld [vmem:[%s241_s0] sm:$0x3] }
   0x3   :  { %v148_v3 = vmul.f32 -1.442695, %v15_v1 }
   0x4   :  { %8 = vsyncpa [#allocation3], 0  ;;  %154 = vmatpush3.xpose.msk.msra.mxu0 %vm24_vm0, %v23_v0  ;;  %v101_v8 = vlaneseq  ;;  %v196_v9 = vmov 0   ;;  %v115_v17 = vld [vmem:[%s243_s2] sm:$0xff]  ;;  %s197_s16 = smov [#allocation2]  }
   0x5   :  { %166 = vpow2.f32 %v148_v3  ;;  %164 = vset.pattern.permute.xlu1 %v196_v9  ;;  %165 = vset.pattern.permute.xlu0 %v196_v9  ;;  %s137_s17 = sshll.u32 %s197_s16, 4  ;;  %s138_s17 = int_to_ptr.vmem [resolvable:$true] %s137_s17 }
   0x6   :  { %v102_v10 = vshrl.u32 %v101_v8, 7  ;;  %s170_s18 = scalar_lea.vmem %s138_s17, 512  ;;  %p175_p1 = scmp.lt.s32.totalorder %s138_s17, %s138_s17 }
   0x7   :  { %p171_p0 = scmp.ne.s32.totalorder %s138_s17, %s170_s18  ;;  %p176_p2 = scmp.lt.s32.totalorder %s170_s18, %s170_s18 }
   0x8   :  { %v103_v11 = vsub.s32 0, %v102_v10  ;;  %v110_v15 = vsub.s32 1, %v102_v10 }
   0x9   :  { %p177_p3 = por %p176_p2, %p175_p1 }
   0xb   :  { %p178_p4 = pnand %p177_p3, %p171_p0 }
   0xf   :  { %v167_v4 = vpop.eup %166 }
  0x10   :  { %v19_v5 = vadd.f32 1.0, %v167_v4 }
  0x12   :  { %168 = vrcp.f32 %v19_v5 }
  0x1c   :  { %v169_v6 = vpop.eup %168 }
  0x1d   :  { %v22_v7 = vmul.f32 %v169_v6, %v15_v1 }
  0x1f   :  { %156 = vmatmul.mubr.msk.f32.vlgmr.msra.gmra.mrb[0].mxu0 %vm24_vm0, %v22_v7 }
  0xf2   :  { %v97_v12 = vpop.f32.mrb[0].mxu0 }
  0xf3   :  { %v157_v13 = vpop.f32.mrb[1].mxu0  ;;  %v104_v14 = vrot.slane %v97_v12, %v103_v11  ;;  %v111_v16 = vrot.slane %v97_v12, %v110_v15 }
  0xf5   :  { %106 = vbcast.lane.b32.xlu0 %v104_v14, 256 }
  0xf9   :  { %113 = vbcast.lane.b32.xlu0 %v111_v16, 256 }
 0x167   :  { %v107_v18 = vpop.permute.xlu0 %106 }
 0x168   :  { %v116_v19 = vadd.f32 %v115_v17, %v107_v18 }
 0x16a   :  { %120 = vperm.xlu1 %164, %v116_v19  }
 0x16b   :  { %v114_v20 = vpop.permute.xlu0 %113 }
 0x16c   :  { %v117_v21 = vadd.f32 %v115_v17, %v114_v20 }
 0x16e   :  { %125 = vperm.xlu1 %164, %v117_v21  }
 0x1e9   :  { %v121_v22 = vpop.permute.xlu1 %120 }
 0x1ea   :  { %128 = vst [vmem:[#allocation2] sm:$0xff] %v121_v22  ;;  %129 = vst [vmem:[#allocation2 + $0x8] sm:$0xff] %v121_v22 }
 0x1ed   :  { %v126_v23 = vpop.permute.xlu1 %125 }
 0x1ee   :  { %130 = vst [vmem:[#allocation2 + $0x10] sm:$0xff] %v126_v23  ;;  %131 = vst [vmem:[#allocation2 + $0x18] sm:$0xff] %v126_v23 }
 0x1ef   :  { %181 = shalt.err (!%p178_p4)
}
 0x1f0   :  { %s182_s20 = scalar_lea.hbm %s244_s3, 512 }
 0x1f1   :  { %p183_p5 = scmp.ne.s32.totalorder %s244_s3, %s182_s20  ;;  %p186_p6 = scmp.lt.u32.totalorder %s182_s20, %s244_s3 }
 0x1f3   :  { %p188_p7 = pnand %p186_p6, %p183_p5 }
 0x1f5   :  { %191 = shalt.err (!%p188_p7)
}
 0x1f6   :  { %s198_s25 = smov 256   ;;  %s199_s26 = smov 16  }
 0x1f7   :  { %143 = dma.vmem_to_hbm [thread:$0]  %s138_s17, 512, %s244_s3, [#allocation3], %s198_s25, %s198_s25, %s199_s26  }
 0x1f8   :  { %192 = dma.done.wait [#allocation3], 512  }
 0x1f9   :  { %193 = vsyncadd [#allocation3], 4294966784 }
 0x1fa   :  { %147 = vsyncpa [#allocation3], 1 }

</bundles_post_ra>
